<compile_context>
chip_gen: v5e
topology: v5e:2x2
jax: 0.10.0
libtpu: 0.0.40
codegen_flags: <defaults>
</compile_context>

<pallas_src>
import functools

import jax
import jax.numpy as jnp
from jax import lax
from jax.experimental import pallas as pl
from jax.experimental.pallas import tpu as pltpu

LANE = 128
NUM_CORES = 2   # leading "parallel" axis for v7x megacore (harmless 2-iter loop on v5e/v6e)
SUB = 8         # sublane height of the per-core stats accumulator blocks


def _round_up(x, m):
    return (x + m - 1) // m * m


# ---------------------------------------------------------------------------
# Pass 1: per-feature sum / sum-of-squares of z = ReLU(x@w1 + b1) @ w2 over the
# full batch.  Grid = (core, batch-tile); each core owns one (8, d_out) partial
# accumulator block; rows beyond the true batch (boundary padding / redundant
# clamped tiles) are masked out.
# ---------------------------------------------------------------------------
def _mlp_stats_kernel(x_ref, w1_ref, b1_ref, w2_ref, sum_ref, sumsq_ref, *,
                      batch, tile_b, tiles_per_core):
    c = pl.program_id(0)
    i = pl.program_id(1)

    @pl.when(i == 0)
    def _():
        sum_ref[...] = jnp.zeros_like(sum_ref)
        sumsq_ref[...] = jnp.zeros_like(sumsq_ref)

    # Cast x f32 -> bf16 in-kernel (no wrapper-side pad/cast pass over x).
    x = x_ref[...].astype(jnp.bfloat16)
    h = jnp.dot(x, w1_ref[...], preferred_element_type=jnp.float32)
    h = jnp.maximum(h + b1_ref[...], 0.0)
    z = jnp.dot(h.astype(w2_ref.dtype), w2_ref[...],
                preferred_element_type=jnp.float32)

    # Global (unclamped) row index of this tile; rows >= batch (boundary pad and
    # fully-redundant tiles re-read via the clamped index map) are excluded.
    t = c * tiles_per_core + i
    row = t * tile_b + lax.broadcasted_iota(jnp.int32, (tile_b, 1), 0)
    zv = jnp.where(row < batch, z, 0.0)

    # Group rows into (tile_b//8, 8, d_out) so accumulation is plain vreg adds.
    zg = zv.reshape(tile_b // SUB, SUB, zv.shape[-1])
    sum_ref[...] += jnp.sum(zg, axis=0)
    sumsq_ref[...] += jnp.sum(zg * zg, axis=0)


# ---------------------------------------------------------------------------
# Pass 2: recompute z per batch tile and apply the fused BatchNorm affine:
#   out = z * scale + shift       (scale/shift pre-hoisted; b2 cancels exactly)
# ---------------------------------------------------------------------------
def _mlp_bn_apply_kernel(x_ref, w1_ref, b1_ref, w2_ref, scale_ref, shift_ref,
                         o_ref):
    x = x_ref[...].astype(jnp.bfloat16)
    h = jnp.dot(x, w1_ref[...], preferred_element_type=jnp.float32)
    h = jnp.maximum(h + b1_ref[...], 0.0)
    z = jnp.dot(h.astype(w2_ref.dtype), w2_ref[...],
                preferred_element_type=jnp.float32)
    o_ref[...] = z * scale_ref[...] + shift_ref[...]


def prepare_encoder_params(w1, b1, w2, b2, gamma, beta):
    """Pad/cast the static parameters ONCE, outside the per-call hot path."""
    input_dim, hidden_dim = w1.shape
    out_dim = w2.shape[1]
    d_hid = _round_up(hidden_dim, LANE)
    d_out = _round_up(out_dim, LANE)
    f32, bf16 = jnp.float32, jnp.bfloat16

    w1p = jnp.zeros((input_dim, d_hid), bf16).at[:, :hidden_dim].set(w1.astype(bf16))
    b1p = jnp.zeros((1, d_hid), f32).at[:, :hidden_dim].set(b1.reshape(1, -1).astype(f32))
    w2p = jnp.zeros((d_hid, d_out), bf16).at[:hidden_dim, :out_dim].set(w2.astype(bf16))
    gp = jnp.zeros((1, d_out), f32).at[:, :out_dim].set(gamma.reshape(1, -1).astype(f32))
    bp = jnp.zeros((1, d_out), f32).at[:, :out_dim].set(beta.reshape(1, -1).astype(f32))
    # b2 is intentionally dropped: out = gamma*(y - mean_y)/std + beta with
    # y = z + b2 is exactly gamma*(z - mean_z)/std + beta.
    del b2
    return dict(w1p=w1p, b1p=b1p, w2p=w2p, gamma_p=gp, beta_p=bp,
                input_dim=input_dim, out_dim=out_dim)


def encoder_forward(x, params, *, eps=1e-5, tile_b=512):
    """x: (B, input_dim) f32; params from prepare_encoder_params."""
    B, input_dim = x.shape
    assert input_dim == params["input_dim"]
    w1p, b1p, w2p = params["w1p"], params["b1p"], params["w2p"]
    gp, bp = params["gamma_p"], params["beta_p"]
    out_dim = params["out_dim"]
    d_hid = w1p.shape[1]
    d_out = w2p.shape[1]

    tb = min(tile_b, _round_up(B, SUB))
    n_row_tiles = pl.cdiv(B, tb)
    tiles_per_core = pl.cdiv(n_row_tiles, NUM_CORES)

    # Clamp the tile index so no block starts fully outside x; redundant
    # (clamped) tiles are masked to zero inside the kernel via the row < B test.
    def x_map_p1(c, i):
        return (jnp.minimum(c * tiles_per_core + i, n_row_tiles - 1), 0)

    stats_kernel = functools.partial(
        _mlp_stats_kernel, batch=B, tile_b=tb, tiles_per_core=tiles_per_core)

    zsum, zsumsq = pl.pallas_call(
        stats_kernel,
        out_shape=(jax.ShapeDtypeStruct((NUM_CORES * SUB, d_out), jnp.float32),
                   jax.ShapeDtypeStruct((NUM_CORES * SUB, d_out), jnp.float32)),
        grid=(NUM_CORES, tiles_per_core),
        in_specs=[
            pl.BlockSpec((tb, input_dim), x_map_p1),                # x tiles (pipelined)
            pl.BlockSpec((input_dim, d_hid), lambda c, i: (0, 0)),  # w1 (resident)
            pl.BlockSpec((1, d_hid), lambda c, i: (0, 0)),          # b1 (resident)
            pl.BlockSpec((d_hid, d_out), lambda c, i: (0, 0)),      # w2 (resident)
        ],
        out_specs=(
            pl.BlockSpec((SUB, d_out), lambda c, i: (c, 0)),        # per-core sum
            pl.BlockSpec((SUB, d_out), lambda c, i: (c, 0)),        # per-core sumsq
        ),
        compiler_params=pltpu.CompilerParams(
            dimension_semantics=("parallel", "arbitrary")),
    )(x, w1p, b1p, w2p)

    # Finalize once (tiny (1, d_out) math, hoisted out of the per-tile loops):
    # fused scale/shift so pass 2 is a single FMA per element.
    inv_n = jnp.float32(1.0 / B)
    mean_z = jnp.sum(zsum, axis=0, keepdims=True) * inv_n
    var = jnp.sum(zsumsq, axis=0, keepdims=True) * inv_n - mean_z * mean_z
    var = jnp.maximum(var, 0.0)
    inv_std = lax.rsqrt(var + jnp.float32(eps))
    scale = gp * inv_std                 # (1, d_out)
    shift = bp - mean_z * scale          # b2 cancels exactly

    out = pl.pallas_call(
        _mlp_bn_apply_kernel,
        out_shape=jax.ShapeDtypeStruct((B, out_dim), jnp.float32),
        grid=(n_row_tiles,),
        in_specs=[
            pl.BlockSpec((tb, input_dim), lambda i: (i, 0)),
            pl.BlockSpec((input_dim, d_hid), lambda i: (0, 0)),
            pl.BlockSpec((1, d_hid), lambda i: (0, 0)),
            pl.BlockSpec((d_hid, d_out), lambda i: (0, 0)),
            pl.BlockSpec((1, d_out), lambda i: (0, 0)),
            pl.BlockSpec((1, d_out), lambda i: (0, 0)),
        ],
        out_specs=pl.BlockSpec((tb, d_out), lambda i: (i, 0)),      # boundary-masked
        compiler_params=pltpu.CompilerParams(
            dimension_semantics=("parallel",)),                     # megacore-friendly
    )(x, w1p, b1p, w2p, scale, shift)

    return out


def reference_forward(x, w1, b1, w2, b2, gamma, beta, eps=1e-5):
    h = jnp.maximum(x @ w1 + b1, 0.0)
    y = h @ w2 + b2
    mean = jnp.mean(y, axis=0, keepdims=True)
    var = jnp.mean((y - mean) ** 2, axis=0, keepdims=True)
    return (y - mean) / jnp.sqrt(var + eps) * gamma + beta


def _make_params(key, input_dim, intermediate_dim):
    k_w1, k_b1, k_w2, k_b2 = jax.random.split(key, 4)
    bound = 1.0 / jnp.sqrt(jnp.float32(input_dim))
    w1 = jax.random.uniform(k_w1, (input_dim, input_dim), jnp.float32, -bound, bound)
    b1 = jax.random.uniform(k_b1, (1, input_dim), jnp.float32, -bound, bound)
    w2 = jax.random.uniform(k_w2, (input_dim, intermediate_dim), jnp.float32, -bound, bound)
    b2 = jax.random.uniform(k_b2, (1, intermediate_dim), jnp.float32, -bound, bound)
    gamma = jnp.ones((1, intermediate_dim), jnp.float32)   # BatchNorm1d default init
    beta = jnp.zeros((1, intermediate_dim), jnp.float32)
    return w1, b1, w2, b2, gamma, beta


if __name__ == "__main__":
    input_dim, intermediate_dim = 32, 16
    key = jax.random.PRNGKey(0)
    k_params, k_x1, k_x2 = jax.random.split(key, 3)
    w1, b1, w2, b2, gamma, beta = _make_params(k_params, input_dim, intermediate_dim)
    params = prepare_encoder_params(w1, b1, w2, b2, gamma, beta)

    # Small shape consistent with the module (single batch tile, single core used).
    B = 8
    x = jax.random.normal(k_x1, (B, input_dim), jnp.float32)
    out = jax.block_until_ready(encoder_forward(x, params))
    ref = reference_forward(x, w1, b1, w2, b2, gamma, beta)
    assert out.shape == (B, intermediate_dim)
    assert jnp.allclose(out, ref, atol=2e-2, rtol=2e-2), \
        float(jnp.max(jnp.abs(out - ref)))

    # Larger batch: exercises multi-tile accumulation, the 2-way core split with
    # a redundant (fully-masked) clamped tile, boundary-row masking, and the
    # boundary-masked (B, out_dim) output store.
    B2 = 1500
    x2 = jax.random.normal(k_x2, (B2, input_dim), jnp.float32)
    out2 = jax.block_until_ready(encoder_forward(x2, params))
    ref2 = reference_forward(x2, w1, b1, w2, b2, gamma, beta)
    assert out2.shape == (B2, intermediate_dim)
    assert jnp.allclose(out2, ref2, atol=2e-2, rtol=2e-2), \
        float(jnp.max(jnp.abs(out2 - ref2)))

    print("KERNEL_OK")
</pallas_src>

<mosaic_0001>
module attributes {stable_mosaic.version = 11 : i64} {
  func.func @_mlp_stats_kernel(%arg0: i32, %arg1: i32, %arg2: memref<8x32xf32, #tpu.memory_space<vmem>>, %arg3: memref<32x128xbf16, #tpu.memory_space<vmem>>, %arg4: memref<1x128xf32, #tpu.memory_space<vmem>>, %arg5: memref<128x128xbf16, #tpu.memory_space<vmem>>, %arg6: memref<8x128xf32, #tpu.memory_space<vmem>>, %arg7: memref<8x128xf32, #tpu.memory_space<vmem>>) attributes {dimension_semantics = [#tpu.dimension_semantics<parallel>, #tpu.dimension_semantics<arbitrary>], iteration_bounds = array<i64: 2, 1>, scalar_prefetch = 0 : i64, scratch_operands = 0 : i64, tpu.core_type = #tpu.core_type<tc>, window_params = [{transform_indices = @transform_0, window_bounds = array<i64: 8, 32>}, {pipeline_mode = #tpu.pipeline_mode<synchronous>, transform_indices = @transform_1, window_bounds = array<i64: 32, 128>}, {pipeline_mode = #tpu.pipeline_mode<synchronous>, transform_indices = @transform_2, window_bounds = array<i64: 1, 128>}, {pipeline_mode = #tpu.pipeline_mode<synchronous>, transform_indices = @transform_3, window_bounds = array<i64: 128, 128>}, {transform_indices = @transform_4, window_bounds = array<i64: 8, 128>}, {transform_indices = @transform_5, window_bounds = array<i64: 8, 128>}]} {
    %c0_i32 = arith.constant 0 : i32
    %0 = arith.cmpi eq, %arg1, %c0_i32 : i32
    %1 = arith.extui %0 : i1 to i32
    %c0_i32_0 = arith.constant 0 : i32
    %2 = arith.cmpi ne, %1, %c0_i32_0 : i32
    scf.if %2 {
      %cst_22 = arith.constant 0.000000e+00 : f32
      %37 = vector.broadcast %cst_22 : f32 to vector<8x128xf32>
      %c0_23 = arith.constant 0 : index
      %c0_24 = arith.constant 0 : index
      %38 = vector.load %arg6[%c0_23, %c0_24] : memref<8x128xf32, #tpu.memory_space<vmem>>, vector<8x128xf32>
      tpu.vector_store %arg6[%c0_23, %c0_24], %37 {strides = array<i32>} : memref<8x128xf32, #tpu.memory_space<vmem>>, vector<8x128xf32>,
      %cst_25 = arith.constant 0.000000e+00 : f32
      %39 = vector.broadcast %cst_25 : f32 to vector<8x128xf32>
      %c0_26 = arith.constant 0 : index
      %c0_27 = arith.constant 0 : index
      %40 = vector.load %arg7[%c0_26, %c0_27] : memref<8x128xf32, #tpu.memory_space<vmem>>, vector<8x128xf32>
      tpu.vector_store %arg7[%c0_26, %c0_27], %39 {strides = array<i32>} : memref<8x128xf32, #tpu.memory_space<vmem>>, vector<8x128xf32>,
    } else {
    }
    %c0 = arith.constant 0 : index
    %c0_1 = arith.constant 0 : index
    %3 = vector.load %arg2[%c0, %c0_1] : memref<8x32xf32, #tpu.memory_space<vmem>>, vector<8x32xf32>
    %4 = arith.truncf %3 : vector<8x32xf32> to vector<8x32xbf16>
    %c0_2 = arith.constant 0 : index
    %c0_3 = arith.constant 0 : index
    %5 = vector.load %arg3[%c0_2, %c0_3] : memref<32x128xbf16, #tpu.memory_space<vmem>>, vector<32x128xbf16>
    %cst = arith.constant dense<0.000000e+00> : vector<8x128xf32>
    %6 = tpu.matmul %4, %5, %cst {dimension_numbers = #tpu.dot_dimension_numbers<[1], [0], [0], [1], [0, 0, 1, 1], [], []>} : vector<8x32xbf16>, vector<32x128xbf16>, vector<8x128xf32> -> vector<8x128xf32>
    %c0_4 = arith.constant 0 : index
    %c0_5 = arith.constant 0 : index
    %7 = vector.load %arg4[%c0_4, %c0_5] : memref<1x128xf32, #tpu.memory_space<vmem>>, vector<1x128xf32>
    %8 = vector.broadcast %7 : vector<1x128xf32> to vector<8x128xf32>
    %9 = arith.addf %6, %8 : vector<8x128xf32>
    %cst_6 = arith.constant 0.000000e+00 : f32
    %10 = vector.broadcast %cst_6 : f32 to vector<8x128xf32>
    %11 = arith.maximumf %9, %10 : vector<8x128xf32>
    %12 = arith.truncf %11 : vector<8x128xf32> to vector<8x128xbf16>
    %c0_7 = arith.constant 0 : index
    %c0_8 = arith.constant 0 : index
    %13 = vector.load %arg5[%c0_7, %c0_8] : memref<128x128xbf16, #tpu.memory_space<vmem>>, vector<128x128xbf16>
    %cst_9 = arith.constant dense<0.000000e+00> : vector<8x128xf32>
    %14 = tpu.matmul %12, %13, %cst_9 {dimension_numbers = #tpu.dot_dimension_numbers<[1], [0], [0], [1], [0, 0, 1, 1], [], []>} : vector<8x128xbf16>, vector<128x128xbf16>, vector<8x128xf32> -> vector<8x128xf32>
    %c1_i32 = arith.constant 1 : i32
    %15 = arith.muli %arg0, %c1_i32 : i32
    %16 = arith.addi %15, %arg1 : i32
    %c8_i32 = arith.constant 8 : i32
    %17 = arith.muli %16, %c8_i32 : i32
    %18 = tpu.iota {dimensions = array<i32: 0>} : vector<8x1xi32>
    %19 = vector.broadcast %17 : i32 to vector<8x1xi32>
    %20 = arith.addi %19, %18 : vector<8x1xi32>
    %c8_i32_10 = arith.constant 8 : i32
    %21 = vector.broadcast %c8_i32_10 : i32 to vector<8x1xi32>
    %22 = arith.cmpi slt, %20, %21 : vector<8x1xi32>
    %cst_11 = arith.constant 0.000000e+00 : f32
    %23 = vector.shape_cast %22 : vector<8x1xi1> to vector<8x1xi1>
    %24 = vector.broadcast %23 : vector<8x1xi1> to vector<8x128xi1>
    %25 = vector.broadcast %cst_11 : f32 to vector<8x128xf32>
    %26 = arith.select %24, %14, %25 : vector<8x128xi1>, vector<8x128xf32>
    %27 = vector.shape_cast %26 : vector<8x128xf32> to vector<1x8x128xf32>
    %c0_12 = arith.constant 0 : index
    %c0_13 = arith.constant 0 : index
    %28 = vector.load %arg6[%c0_12, %c0_13] : memref<8x128xf32, #tpu.memory_space<vmem>>, vector<8x128xf32>
    %cst_14 = arith.constant dense<0.000000e+00> : vector<8x128xf32>
    %29 = vector.multi_reduction <add>, %27, %cst_14 [0] : vector<1x8x128xf32> to vector<8x128xf32>
    %30 = arith.addf %28, %29 : vector<8x128xf32>
    %c0_15 = arith.constant 0 : index
    %c0_16 = arith.constant 0 : index
    %31 = vector.load %arg6[%c0_15, %c0_16] : memref<8x128xf32, #tpu.memory_space<vmem>>, vector<8x128xf32>
    tpu.vector_store %arg6[%c0_15, %c0_16], %30 {strides = array<i32>} : memref<8x128xf32, #tpu.memory_space<vmem>>, vector<8x128xf32>,
    %c0_17 = arith.constant 0 : index
    %c0_18 = arith.constant 0 : index
    %32 = vector.load %arg7[%c0_17, %c0_18] : memref<8x128xf32, #tpu.memory_space<vmem>>, vector<8x128xf32>
    %33 = arith.mulf %27, %27 : vector<1x8x128xf32>
    %cst_19 = arith.constant dense<0.000000e+00> : vector<8x128xf32>
    %34 = vector.multi_reduction <add>, %33, %cst_19 [0] : vector<1x8x128xf32> to vector<8x128xf32>
    %35 = arith.addf %32, %34 : vector<8x128xf32>
    %c0_20 = arith.constant 0 : index
    %c0_21 = arith.constant 0 : index
    %36 = vector.load %arg7[%c0_20, %c0_21] : memref<8x128xf32, #tpu.memory_space<vmem>>, vector<8x128xf32>
    tpu.vector_store %arg7[%c0_20, %c0_21], %35 {strides = array<i32>} : memref<8x128xf32, #tpu.memory_space<vmem>>, vector<8x128xf32>,
    return
  }
  func.func @transform_0(%arg0: i32, %arg1: i32) -> (i32, i32) {
    %c1_i32 = arith.constant 1 : i32
    %0 = arith.muli %arg0, %c1_i32 : i32
    %1 = arith.addi %0, %arg1 : i32
    %c0_i32 = arith.constant 0 : i32
    %2 = arith.minsi %1, %c0_i32 : i32
    %c0_i32_0 = arith.constant 0 : i32
    %c0_i32_1 = arith.constant 0 : i32
    return %2, %c0_i32_0 : i32, i32
  }
  func.func @transform_1(%arg0: i32, %arg1: i32) -> (i32, i32) {
    %c0_i32 = arith.constant 0 : i32
    %c0_i32_0 = arith.constant 0 : i32
    %c0_i32_1 = arith.constant 0 : i32
    return %c0_i32, %c0_i32_0 : i32, i32
  }
  func.func @transform_2(%arg0: i32, %arg1: i32) -> (i32, i32) {
    %c0_i32 = arith.constant 0 : i32
    %c0_i32_0 = arith.constant 0 : i32
    %c0_i32_1 = arith.constant 0 : i32
    return %c0_i32, %c0_i32_0 : i32, i32
  }
  func.func @transform_3(%arg0: i32, %arg1: i32) -> (i32, i32) {
    %c0_i32 = arith.constant 0 : i32
    %c0_i32_0 = arith.constant 0 : i32
    %c0_i32_1 = arith.constant 0 : i32
    return %c0_i32, %c0_i32_0 : i32, i32
  }
  func.func @transform_4(%arg0: i32, %arg1: i32) -> (i32, i32) {
    %c0_i32 = arith.constant 0 : i32
    %c0_i32_0 = arith.constant 0 : i32
    return %arg0, %c0_i32 : i32, i32
  }
  func.func @transform_5(%arg0: i32, %arg1: i32) -> (i32, i32) {
    %c0_i32 = arith.constant 0 : i32
    %c0_i32_0 = arith.constant 0 : i32
    return %arg0, %c0_i32 : i32, i32
  }
}

</mosaic_0001>

<bundles_post_ra>
// kernel: tpu_custom_call.1
= control target key start
LH: loop header
LB: loop body
LE: loop exit
PB: predicated region body
PF: predicated region fallthrough
CT: control target
= control target key end

     0   :  { %s1259_s0 = inlined_call_operand.hbm [shape: f32[8,32], index: 0, kind: input, shape index: {}]   ;;  %s1260_s1 = inlined_call_operand.hbm [shape: bf16[32,128], index: 1, kind: input, shape index: {}]   ;;  %s1261_s2 = inlined_call_operand.vmem [shape: f32[1,128], index: 2, kind: input, shape index: {}]   ;;  %s1262_s3 = inlined_call_operand.hbm [shape: bf16[128,128], index: 3, kind: input, shape index: {}]   ;;  %s1263_s4 = inlined_call_operand.hbm [shape: f32[16,128], index: 4, kind: output, shape index: {0}]   ;;  %s1264_s5 = inlined_call_operand.hbm [shape: f32[16,128], index: 5, kind: output, shape index: {1}]  }
   0x1   :  { %1265 = sst [smem:[#allocation15_spill]] %s1259_s0 }
   0x2   :  { %11 = vsyncpa [#allocation3], 0 }
   0x3   :  { %13 = vsyncpa [#allocation3 + $0x1], 0 }
   0x4   :  { %14 = vsyncpa [#allocation6], 0 }
   0x5   :  { %15 = vsyncpa [#allocation4], 0 }
   0x6   :  { %17 = vsyncpa [#allocation4 + $0x1], 0 }
   0x7   :  { %18 = vsyncpa [#allocation10], 0 }
   0x8   :  { %20 = vsyncpa [#allocation10 + $0x1], 0  ;;  %s1073_s18 = smov 0   ;;  %s1075_s19 = smov 0  }
   0x9   :  { %s1077_s20 = smov 0   ;;  %s1079_s21 = smov 0  }
   0xa   :  { %s1081_s22 = smov 0   ;;  %s1083_s23 = smov 0  }
   0xb   :  { %s1085_s24 = smov 0   ;;  %s1087_s25 = smov 0  }
   0xc LB: > { %s619_s26 = sadd.s32 4294967295, %s1036_s25   ;;  %s620_s27 = sadd.s32 4294967294, %s1036_s25   ;;  %s1036_s25 = sphi %s1087_s25, %s26_s25   ;;  %s1032_s24 = sphi %s1085_s24, %s1278_s24   ;;  %s1028_s23 = sphi %s1083_s23, %s1277_s23   ;;  %s1024_s22 = sphi %s1081_s22, %s1249_s22   ;;  %s1020_s21 = sphi %s1079_s21, %s1276_s21   ;;  %s1016_s20 = sphi %s1077_s20, %s1275_s20   ;;  %s1012_s19 = sphi %s1075_s19, %s1274_s19   ;;  %s1008_s18 = sphi %s1073_s18, %s1273_s18  }
   0xd   : > { %p1115_p0 = scmp.eq.s32.totalorder %s619_s26, 0  ;;  %p150_p1 = scmp.ne.s32.totalorder %s1016_s20, %s1012_s19 }
   0xe   : > { %p151_p2 = scmp.eq.s32.totalorder %s619_s26, 1  ;;  %p156_p3 = scmp.ne.s32.totalorder %s1012_s19, %s1008_s18 }
   0xf   : > { %p157_p4 = scmp.eq.s32.totalorder %s620_s27, 1  ;;  %p621_p5 = scmp.ge.s32.totalorder %s1036_s25, 1 }
  0x10   : > { %p1124_p6 = por %p151_p2, %p150_p1  ;;  %p190_p7 = scmp.lt.s32.totalorder %s1036_s25, 3 }
  0x11   : > { %p1129_p8 = por %p157_p4, %p156_p3  ;;  %s201_s9 = sshll.u32 %s1260_s1, 4  ;;  %s202_s9 = int_to_ptr.hbm [resolvable:$true] %s201_s9 }
  0x12   : > { %p1133_p9 = pnand %p621_p5, %p190_p7  ;;  %s1038_s10 = smov [#allocation5]  }
  0x13   : > { %s203_s11 = sshll.u32 %s1038_s10, 4  ;;  %s218_s14 = sshll.u32 %s1262_s3, 4  ;;  %s204_s11 = int_to_ptr.vmem [resolvable:$true] %s203_s11  ;;  %s219_s14 = int_to_ptr.hbm [resolvable:$true] %s218_s14 }
  0x14   : > { %p705_p10 = pneg %p1133_p9  ;;  %s1039_s15 = smov 64  }
  0x15   : > { %s1040_s16 = smov 4   ;;  %s1041_s17 = smov [#allocation7]  }
  0x16   : > { %p706_p11 = pnand %p705_p10, %p1115_p0  ;;  %s220_s26 = sshll.u32 %s1041_s17, 4  ;;  %s221_s26 = int_to_ptr.vmem [resolvable:$true] %s220_s26 }
  0x17   : > { %s38_s27 = sadd.s32 1, %s1032_s24  ;;  %p1005_p1 = scmp.ne.s32.totalorder %s1024_s22, 0 }
  0x18   : > { %708 = dma.hbm_to_vmem [thread:$0]  (!%p706_p11), %s202_s9, 256, %s204_s11, [#allocation6], %s1039_s15, %s1039_s15, %s1040_s16  }
  0x19   : > { %711 = dma.hbm_to_vmem [thread:$0]  (!%p706_p11), %s219_s14, 1024, %s221_s26, [#allocation6], %s1039_s15, %s1039_s15, %s1040_s16  }
  0x1a   : > { %p40_p13 = scmp.ge.s32.totalorder %s38_s27, 2  ;;  %p59_p2 = scmp.eq.s32.totalorder %s1036_s25, 0 }
  0x1b   : > { %p64_p3 = scmp.ne.s32.totalorder %s1024_s22, %s1020_s21  ;;  %s140_s9 = sadd.s32 1, %s1016_s20 }
  0x1c   : > { %s1280_s27 = smov (%p40_p13, %s38_s27), 0  ;;  %p60_p4 = por %p1005_p1, %p59_p2 }
  0x1d   : > { %s137_s7 = ssub.s32 %s1032_s24, %s1280_s27  ;;  %p1159_p5 = por %p1115_p0, %p64_p3 }
  0x1e   : > { %p138_p7 = scmp.eq.s32.totalorder %s137_s7, 0  ;;  %p725_p10 = scmp.lt.s32.totalorder %s1036_s25, 2 }
  0x1f   : > { %s1042_s11 = smov [#allocation2]   ;;  %s1271_s0 = sld [smem:[#allocation15_spill]] }
  0x20   : > { %s1165_s10 = scalar_select %p138_p7, %s1016_s20, %s140_s9  }
  0x21   : > { %s249_s12 = sshll.u32 %s1042_s11, 4  ;;  %p713_p11 = pnand %p725_p10, %p60_p4  ;;  %s250_s12 = int_to_ptr.vmem [resolvable:$true] %s249_s12 }
  0x23   : > { %p871_p1 = pneg %p713_p11 }
  0x25   : > { %s247_s15 = sshll.u32 %s1271_s0, 4  ;;  %s874_s7 = scalar_lea.hbm %s1271_s0, 8  ;;  %s248_s15 = int_to_ptr.hbm [resolvable:$true] %s247_s15 }
  0x26   : > { %s867_s21 = sshra.s32 %s248_s15, 4  ;;  %s868_s21 = int_to_ptr.hbm [resolvable:$true] %s867_s21 }
  0x27   : > { %s869_s16 = scalar_lea.hbm %s868_s21, 8 }
  0x28   : > { %p870_p13 = scmp.ne.s32.totalorder %s868_s21, %s869_s16  ;;  %p876_p7 = scmp.lt.s32.totalorder %s874_s7, %s869_s16 }
  0x2a   : > { %p872_p2 = pnand %p871_p1, %p870_p13 }
  0x2c   : > { %p873_p3 = pneg %p872_p2 }
  0x2e   : > { %p878_p12 = pnand %p876_p7, %p873_p3 }
  0x30   : > { %881 = shalt.err (!%p878_p12)
}
  0x31   : > { %715 = dma.hbm_to_vmem [thread:$0]  (!%p713_p11), %s248_s15, 128, %s250_s12, [#allocation3]  }
  0x32   : > { %258 = sbr.rel (%p1133_p9) target bundleno = 340 (0x154), region = 36  ;;  %s260_s9 = sand.u32 (!%p1133_p9), 1, %s1024_s22  }
  0x33   : > { %s628_s11 = sshll.u32 (!%p1133_p9), %s260_s9, 3  ;;  %s261_s13 = scalar_lea.sflag (!%p1133_p9), [#allocation3], %s260_s9 }
  0x34   : > { %s264_s14 = scalar_lea.vmem (!%p1133_p9), [#allocation2], %s628_s11 }
  0x37   : > { %990 = dma.done.wait (%p1159_p5), %s261_s13, 128  }
  0x38   : > { %992 = vsyncadd (%p1159_p5), %s261_s13, 4294967168 }
  0x39   : > { %994 = dma.done.wait (%p1115_p0), [#allocation6], 1280  }
  0x3a   : > { %996 = vsyncadd (%p1115_p0), [#allocation6], 4294966016  ;;  %v682_v0 = vld [vmem:[#allocation5 + $0x8] sm:$0xff]  ;;  %v681_v2 = vld [vmem:[#allocation5] sm:$0xff]  ;;  %vm339_vm0 = vcmask 261120   ;;  %v437_v18 = vlaneseq  ;;  %s674_s8 = sshll.u32 %s1028_s23, 3 }
  0x3b   : > { %v690_v1 = vld [vmem:[#allocation7 + $0x38] sm:$0xff]  ;;  %349 = vmatpush.bf16.msra.mxu0 %v682_v0  ;;  %v317_v3 = vld [vmem:[%s264_s14] sm:$0xff]  ;;  %v689_v4 = vld [vmem:[#allocation7 + $0x30] sm:$0xff]  ;;  %s1190_s12 = sand.u32 1, %s1012_s19   ;;  %v439_v20 = vstv %s674_s8  ;;  %s470_s17 = scalar_lea.hbm %s1263_s4, %s674_s8 }
  0x3c   : > { %422 = vmatpush.bf16.msra.mxu1 %v690_v1  ;;  %v318_v5 = vpack.c.bf16 %v317_v3, %v317_v3  ;;  %v688_v6 = vld [vmem:[#allocation7 + $0x28] sm:$0xff]  ;;  %v687_v7 = vld [vmem:[#allocation7 + $0x20] sm:$0xff]  ;;  %v686_v8 = vld [vmem:[#allocation7 + $0x18] sm:$0xff]  ;;  %v438_v19 = vshrl.u32 %v437_v18, 7  ;;  %s631_s15 = sshll.u32 %s1190_s12, 3  ;;  %s484_s9 = scalar_lea.hbm %s1264_s5, %s674_s8 }
  0x3d   : > { %v685_v9 = vld [vmem:[#allocation7 + $0x10] sm:$0xff]  ;;  %v684_v10 = vld [vmem:[#allocation7 + $0x8] sm:$0xff]  ;;  %v683_v11 = vld [vmem:[#allocation7] sm:$0xff]  ;;  %s299_s11 = scalar_lea.vmem [#allocation8], %s631_s15  ;;  %s474_s23 = sshll.u32 %s470_s17, 4  ;;  %s475_s23 = int_to_ptr.hbm [resolvable:$true] %s474_s23 }
  0x3e   : > { %v806_v12 = vld [vmem:[%s1261_s2] ss:$0 sm:$0xff]  ;;  %v440_v21 = vadd.s32 %v439_v20, %v438_v19  ;;  %s472_s13 = sshll.u32 %s299_s11, 4  ;;  %s306_s14 = scalar_lea.vmem [#allocation9], %s631_s15  ;;  %s473_s13 = int_to_ptr.vmem [resolvable:$true] %s472_s13 }
  0x3f   : > { %350 = vmatpush.bf16.msra.mxu0 %v681_v2  ;;  %s486_s28 = sshll.u32 %s306_s14, 4  ;;  %s1199_s6 = sshll.u32 %s484_s9, 4  ;;  %s1201_s28 = int_to_ptr.vmem [resolvable:$true] %s486_s28  ;;  %s489_s6 = int_to_ptr.hbm [resolvable:$true] %s1199_s6 }
  0x40   : > { %423 = vmatpush.bf16.msra.mxu1 %v689_v4  ;;  %vm441_vm1 = vcmp.lt.s32.totalorder %v440_v21, 8  ;;  %s455_s21 = scalar_lea.sflag [#allocation4], %s1190_s12  ;;  %s911_s8 = sshra.s32 %s475_s23, 4  ;;  %s912_s8 = int_to_ptr.hbm [resolvable:$true] %s911_s8 }
  0x41   : > { %s913_s16 = scalar_lea.hbm %s912_s8, 8  ;;  %s917_s26 = scalar_lea.hbm %s1263_s4, 16 }
  0x42   : > { %641 = vmatmul.msk.bf16.vlgmr.msra.gmra.mxu0 %vm339_vm0, %v318_v5  ;;  %p914_p0 = scmp.ne.s32.totalorder %s912_s8, %s913_s16  ;;  %p918_p4 = scmp.lt.s32.totalorder %s912_s8, %s1263_s4 }
  0x43   : > { %p919_p5 = scmp.lt.s32.totalorder %s917_s26, %s913_s16 }
  0x44   : > { %424 = vmatpush.bf16.msra.mxu1 %v688_v6  ;;  %p915_p9 = pnand %p914_p0, %p1124_p6 }
  0x45   : > { %p920_p10 = por %p919_p5, %p918_p4 }
  0x46   : > { %p916_p12 = pneg %p915_p9 }
  0x48   : > { %425 = vmatpush.bf16.msra.mxu1 %v687_v7  ;;  %p921_p11 = pnand %p920_p10, %p916_p12 }
  0x4c   : > { %426 = vmatpush.bf16.msra.mxu1 %v686_v8 }
  0x50   : > { %427 = vmatpush.bf16.msra.mxu1 %v685_v9 }
  0x54   : > { %428 = vmatpush.bf16.msra.mxu1 %v684_v10 }
  0x58   : > { %429 = vmatpush.bf16.msra.mxu1 %v683_v11 }
  0xbf   : > { %v352_v13 = vpop.f32.mrf.mxu0 }
  0xc0   : > { %v353_v14 = vadd.f32 %v806_v12, %v352_v13 }
  0xc2   : > { %v356_v15 = vmax.f32 %v353_v14, 0.0 }
  0xc4   : > { %v357_v16 = vpack.c.bf16 %v356_v15, %v356_v15 }
  0xc6   : > { %430 = vmatmul.bf16.vlgmr.msra.gmra.mxu1 %v357_v16 }
  0xc7   : > { %v354_v17 = vpop.f32.mrf.mxu0 }
 0x143   : > { %v431_v22 = vpop.f32.mrf.mxu1 }
 0x144   : > { %v444_v23 = vsel %vm441_vm1, %v431_v22, 0.0 }
 0x145   : > { %v450_v24 = vmul.f32 %v444_v23, %v444_v23  ;;  %448 = vst [vmem:[%s299_s11] sm:$0xff] %v444_v23 }
 0x146   : > { %924 = shalt.err (!%p921_p11)
}
 0x147   : > { %701 = dma.vmem_to_hbm [thread:$0]  (%p1124_p6), %s473_s13, 128, %s475_s23, %s455_s21   ;;  %453 = vst [vmem:[%s306_s14] sm:$0xff] %v450_v24 }
 0x148   : > { %s460_s11 = scalar_lea.sflag [#allocation10], %s1190_s12  ;;  %s939_s0 = sshra.s32 %s489_s6, 4  ;;  %s940_s0 = int_to_ptr.hbm [resolvable:$true] %s939_s0 }
 0x149   : > { %s941_s15 = scalar_lea.hbm %s940_s0, 8  ;;  %s945_s17 = scalar_lea.hbm %s1264_s5, 16 }
 0x14a   : > { %p942_p13 = scmp.ne.s32.totalorder %s940_s0, %s941_s15  ;;  %p946_p3 = scmp.lt.s32.totalorder %s940_s0, %s1264_s5 }
 0x14b   : > { %p947_p7 = scmp.lt.s32.totalorder %s945_s17, %s941_s15 }
 0x14c   : > { %p943_p1 = pnand %p942_p13, %p1124_p6 }
 0x14d   : > { %p948_p0 = por %p947_p7, %p946_p3 }
 0x14e   : > { %p944_p2 = pneg %p943_p1 }
 0x150   : > { %p949_p9 = pnand %p948_p0, %p944_p2 }
 0x152   : > { %952 = shalt.err (!%p949_p9)
}
 0x153   : > { %702 = dma.vmem_to_hbm [thread:$0]  (%p1124_p6), %s1201_s28, 128, %s489_s6, %s460_s11   ;;  %v433_v25 = vpop.f32.mrf.mxu1 }
 0x154 PF: > { %s500_s12 = sand.u32 1, %s1008_s18   ;;  %p1272_p12 = scmp.ge.s32.totalorder %s1036_s25, 2 }
 0x155   : > { %s501_s0 = scalar_lea.sflag [#allocation4], %s500_s12 }
 0x156   : > { %p717_p4 = pnand %p1272_p12, %p1129_p8 }
 0x158   : > { %p718_p5 = pneg %p717_p4 }
 0x15a   : > { %998 = dma.done.wait (%p718_p5), %s501_s0, 128  }
 0x15b   : > { %1000 = vsyncadd (%p718_p5), %s501_s0, 4294967168  ;;  %s511_s13 = scalar_lea.sflag [#allocation10], %s500_s12 }
 0x15c   : > { %1002 = dma.done.wait (%p718_p5), %s511_s13, 128  }
 0x15d   : > { %1004 = vsyncadd (%p718_p5), %s511_s13, 4294967168  ;;  %s26_s25 = sadd.s32 1, %s1036_s25   ;;  %s1273_s18 = smov %s1012_s19 }
 0x15e   : > { %p23_p10 = scmp.ge.s32.totalorder %s26_s25, 4   ;;  %s1274_s19 = smov %s1016_s20 }
 0x15f   : > { %s1275_s20 = smov %s1165_s10  ;;  %s1276_s21 = smov %s1024_s22 }
 0x160   : > { %s1249_s22 = smov 0   ;;  %s1277_s23 = smov %s1032_s24 }
 0x161   : > { %s1278_s24 = smov %s1280_s27  ;;  %25 = sbr.rel (!%p23_p10) target bundleno = 12 (0xc), region = 110 }
 0x166   :  { %517 = vsyncpa [#allocation3], 1 }
 0x167   :  { %519 = vsyncpa [#allocation3 + $0x1], 1 }
 0x168   :  { %520 = vsyncpa [#allocation6], 1 }
 0x169   :  { %521 = vsyncpa [#allocation4], 1 }
 0x16a   :  { %523 = vsyncpa [#allocation4 + $0x1], 1 }
 0x16b   :  { %524 = vsyncpa [#allocation10], 1 }
 0x16c   :  { %526 = vsyncpa [#allocation10 + $0x1], 1 }

</bundles_post_ra>
